<compile_context>
chip_gen: v6e
topology: v6e:2x2x1
jax: 0.10.0
libtpu: 0.0.40
codegen_flags: <defaults>
</compile_context>

<pallas_src>
import math

import jax
import jax.numpy as jnp
from jax.experimental import pallas as pl
from jax.experimental.pallas import tpu as pltpu

B, S, D = 2, 8, 32          # batch, seq, model dim
H = 4                       # attention heads
DK = D // H                 # per-head dim
DFF = 64                    # feed-forward hidden dim
EPS = 1e-6                  # LayerNorm eps (added to std, as in the torch module)

# Row offsets inside the packed parameter slabs (see fuse_params()).
#   wmat  : (192, 32) = [Wq*scale ; Wk ; Wv ; Wo ; W2]            (row-stacked)
#   wmisc : (48, 64)  = [W1 ; b1 ; 9 length-D vectors ; 4 head lane masks ; pad]
ROW_B1 = D                              # 32
ROW_LN1A, ROW_LN1B = 33, 34
ROW_BQ, ROW_BK, ROW_BV, ROW_BO = 35, 36, 37, 38
ROW_LN2A, ROW_LN2B, ROW_B2 = 39, 40, 41
ROW_HMASK = 42                          # rows 42..45: 0/1 lane masks for heads 0..3
MISC_ROWS = 48                          # padded to a multiple of 8 sublanes


def _layernorm(v, a, b):
    """Matches the custom PyTorch LayerNorm: unbiased std, eps added to std."""
    mean = jnp.mean(v, axis=-1, keepdims=True)
    var = jnp.sum((v - mean) ** 2, axis=-1, keepdims=True) / (D - 1)   # ddof=1
    return a * (v - mean) / (jnp.sqrt(var) + EPS) + b


def encoder_layer_kernel(x_ref, bias_ref, wmat_ref, misc_ref, out_ref):
    x = x_ref[...].reshape(B * S, D)          # (16, 32) flattened token rows
    mask_bias = bias_ref[...]                 # (B, S, S) additive, precomputed

    # Static (zero-cost) views into the two packed parameter slabs.
    wq = wmat_ref[0 * D:1 * D, :]             # 1/sqrt(DK) pre-folded into Wq, bq
    wk = wmat_ref[1 * D:2 * D, :]
    wv = wmat_ref[2 * D:3 * D, :]
    wo = wmat_ref[3 * D:4 * D, :]
    w2 = wmat_ref[4 * D:4 * D + DFF, :]
    w1 = misc_ref[0:D, :]                     # (32, 64)
    b1 = misc_ref[ROW_B1:ROW_B1 + 1, :]       # (1, 64)

    def vec(row):                             # (1, D) parameter row view
        return misc_ref[row:row + 1, 0:D]

    ln1a, ln1b = vec(ROW_LN1A), vec(ROW_LN1B)
    bq, bk, bv, bo = vec(ROW_BQ), vec(ROW_BK), vec(ROW_BV), vec(ROW_BO)
    ln2a, ln2b, b2 = vec(ROW_LN2A), vec(ROW_LN2B), vec(ROW_B2)

    # ---- sublayer[0]: x + attn(norm(x)) ------------------------------------
    xn = _layernorm(x, ln1a, ln1b)
    # Three full-width projections (no sub-128-lane slicing of a fused QKV output).
    q = jnp.dot(xn, wq, preferred_element_type=jnp.float32) + bq                   # (16, 32)
    k = (jnp.dot(xn, wk, preferred_element_type=jnp.float32) + bk).reshape(B, S, D)
    v = (jnp.dot(xn, wv, preferred_element_type=jnp.float32) + bv).reshape(B, S, D)

    # Per-head attention without lane-extract relayouts: head h is selected by a
    # 0/1 lane mask on Q (zero lanes kill cross-head terms of the full-D
    # contraction exactly) and its context is merged back by masking the full-D
    # P @ V product.  Single-batch-dim einsums only (confirmed Mosaic lowering).
    ctx = jnp.zeros((B, S, D), jnp.float32)
    for h in range(H):                        # static unroll, H = 4
        hm = vec(ROW_HMASK + h)               # (1, D) 0/1 mask of head-h lanes
        qh = (q * hm).reshape(B, S, D)
        s = jnp.einsum('bqd,bkd->bqk', qh, k,
                       preferred_element_type=jnp.float32) + mask_bias
        s = s - jnp.max(s, axis=-1, keepdims=True)
        p = jnp.exp(s)
        p = p / jnp.sum(p, axis=-1, keepdims=True)        # exact softmax denominator
        ctx = ctx + hm * jnp.einsum('bqk,bkd->bqd', p, v,
                                    preferred_element_type=jnp.float32)

    # Single output projection over all heads (replaces 4 tiny K=8 matmuls).
    attn = jnp.dot(ctx.reshape(B * S, D), wo,
                   preferred_element_type=jnp.float32) + bo
    # TODO(synk): dropout is identity (eval mode); training-mode dropout not implemented.
    x1 = x + attn

    # ---- sublayer[1]: x + ff(norm(x)) --------------------------------------
    xn2 = _layernorm(x1, ln2a, ln2b)
    hdn = jnp.maximum(
        jnp.dot(xn2, w1, preferred_element_type=jnp.float32) + b1, 0.0)
    ff = jnp.dot(hdn, w2, preferred_element_type=jnp.float32) + b2

    out_ref[...] = (x1 + ff).reshape(B, S, D)


def fuse_params(params):
    """One-time packing of the 16 parameter arrays into two contiguous f32 slabs."""
    (ln1a, ln1b, wq, bq, wk, bk, wv, bv, wo, bo,
     ln2a, ln2b, w1, b1, w2, b2) = params
    scale = 1.0 / math.sqrt(DK)

    # Slab 1: all D-wide matrices stacked along rows (sublane axis -> cheap views).
    wmat = jnp.concatenate([wq * scale, wk, wv, wo, w2], axis=0)        # (192, 32)

    # Slab 2: W1 plus every vector parameter (padded to 64 lanes) plus the
    # per-head lane masks used inside the kernel.
    def row(vv):
        vv = jnp.asarray(vv, jnp.float32)
        return jnp.pad(vv, (0, DFF - vv.shape[0]))[None, :]

    head_masks = [row((jnp.arange(D) // DK == h).astype(jnp.float32))
                  for h in range(H)]
    rows = ([w1, b1[None, :],
             row(ln1a), row(ln1b),
             row(bq * scale), row(bk), row(bv), row(bo),
             row(ln2a), row(ln2b), row(b2)]
            + head_masks)
    wmisc = jnp.concatenate(rows, axis=0)                               # (46, 64)
    wmisc = jnp.pad(wmisc, ((0, MISC_ROWS - wmisc.shape[0]), (0, 0)))   # (48, 64)
    return wmat, wmisc


def encoder_layer(x, mask, wmat, wmisc):
    # Fold the mask into an additive score bias outside the kernel
    # (matches torch's masked_fill(mask == 0, -1e9)).
    mask_bias = jnp.where(mask == 0, -1e9, 0.0).astype(jnp.float32)     # (B, S, S)

    vmem = pl.BlockSpec(memory_space=pltpu.MemorySpace.VMEM)
    return pl.pallas_call(
        encoder_layer_kernel,
        out_shape=jax.ShapeDtypeStruct((B, S, D), jnp.float32),
        in_specs=[vmem, vmem, vmem, vmem],
        out_specs=vmem,
    )(x, mask_bias, wmat, wmisc)


def encoder_layer_ref(x, mask, params):
    """Pure-JAX reference mirroring the PyTorch forward (eval mode), f32 matmuls."""
    (ln1a, ln1b, wq, bq, wk, bk, wv, bv, wo, bo,
     ln2a, ln2b, w1, b1, w2, b2) = params
    prec = jax.lax.Precision.HIGHEST

    def ln(v, a, b):
        mean = jnp.mean(v, axis=-1, keepdims=True)
        std = jnp.sqrt(jnp.sum((v - mean) ** 2, axis=-1, keepdims=True) / (D - 1))
        return a * (v - mean) / (std + EPS) + b

    xn = ln(x, ln1a, ln1b)
    q = jnp.dot(xn, wq, precision=prec) + bq
    k = jnp.dot(xn, wk, precision=prec) + bk
    v = jnp.dot(xn, wv, precision=prec) + bv
    qh = q.reshape(B, S, H, DK).transpose(0, 2, 1, 3)
    kh = k.reshape(B, S, H, DK).transpose(0, 2, 1, 3)
    vh = v.reshape(B, S, H, DK).transpose(0, 2, 1, 3)
    scores = jnp.einsum("bhqd,bhkd->bhqk", qh, kh, precision=prec) / math.sqrt(DK)
    scores = jnp.where(mask[:, None, :, :] == 0, -1e9, scores)
    p = jax.nn.softmax(scores, axis=-1)
    o = jnp.einsum("bhqk,bhkd->bhqd", p, vh, precision=prec)
    o = o.transpose(0, 2, 1, 3).reshape(B, S, D)
    x1 = x + (jnp.dot(o, wo, precision=prec) + bo)

    xn2 = ln(x1, ln2a, ln2b)
    hdn = jnp.maximum(jnp.dot(xn2, w1, precision=prec) + b1, 0.0)
    return x1 + (jnp.dot(hdn, w2, precision=prec) + b2)


def make_params(key):
    ks = jax.random.split(key, 8)
    scale = 0.1
    params = (
        jnp.ones((D,), jnp.float32),                                   # ln1 a_2
        jnp.zeros((D,), jnp.float32),                                  # ln1 b_2
        scale * jax.random.normal(ks[0], (D, D), jnp.float32),         # Wq
        scale * jax.random.normal(ks[1], (D,), jnp.float32),           # bq
        scale * jax.random.normal(ks[2], (D, D), jnp.float32),         # Wk
        scale * jax.random.normal(ks[3], (D,), jnp.float32),           # bk
        scale * jax.random.normal(ks[4], (D, D), jnp.float32),         # Wv
        scale * jax.random.normal(ks[5], (D,), jnp.float32),           # bv
        scale * jax.random.normal(ks[6], (D, D), jnp.float32),         # Wo
        jnp.zeros((D,), jnp.float32),                                  # bo
        jnp.ones((D,), jnp.float32),                                   # ln2 a_2
        jnp.zeros((D,), jnp.float32),                                  # ln2 b_2
        scale * jax.random.normal(ks[7], (D, DFF), jnp.float32),       # W1
        jnp.zeros((DFF,), jnp.float32),                                # b1
        scale * jax.random.normal(jax.random.fold_in(key, 99),
                                  (DFF, D), jnp.float32),              # W2
        jnp.zeros((D,), jnp.float32),                                  # b2
    )
    return params


if __name__ == "__main__":
    key = jax.random.PRNGKey(0)
    kx, kp = jax.random.split(key)

    x = jax.random.normal(kx, (B, S, D), jnp.float32)
    # causal-style mask, broadcast over batch (0 == masked)
    causal = (jnp.arange(S)[:, None] >= jnp.arange(S)[None, :]).astype(jnp.float32)
    mask = jnp.broadcast_to(causal, (B, S, S))

    params = make_params(kp)
    wmat, wmisc = fuse_params(params)        # one-time parameter packing

    out = jax.block_until_ready(encoder_layer(x, mask, wmat, wmisc))

    ref = encoder_layer_ref(x, mask, params)
    if not jnp.allclose(out, ref, rtol=1e-5, atol=1e-5):
        err = float(jnp.max(jnp.abs(out - ref)))
        raise AssertionError(
            f"Pallas kernel does not match JAX reference (max abs err {err})")

    print("KERNEL_OK")
</pallas_src>

<mosaic_0001>
module attributes {stable_mosaic.version = 11 : i64} {
  func.func @encoder_layer_kernel(%arg0: memref<2x8x32xf32, #tpu.memory_space<vmem>>, %arg1: memref<2x8x8xf32, #tpu.memory_space<vmem>>, %arg2: memref<192x32xf32, #tpu.memory_space<vmem>>, %arg3: memref<48x64xf32, #tpu.memory_space<vmem>>, %arg4: memref<2x8x32xf32, #tpu.memory_space<vmem>>) attributes {dimension_semantics = [], scalar_prefetch = 0 : i64, scratch_operands = 0 : i64, tpu.core_type = #tpu.core_type<tc>} {
    %c0 = arith.constant 0 : index
    %c0_0 = arith.constant 0 : index
    %c0_1 = arith.constant 0 : index
    %0 = vector.load %arg0[%c0, %c0_0, %c0_1] : memref<2x8x32xf32, #tpu.memory_space<vmem>>, vector<2x8x32xf32>
    %1 = vector.shape_cast %0 : vector<2x8x32xf32> to vector<16x32xf32>
    %c0_2 = arith.constant 0 : index
    %c0_3 = arith.constant 0 : index
    %c0_4 = arith.constant 0 : index
    %2 = vector.load %arg1[%c0_2, %c0_3, %c0_4] : memref<2x8x8xf32, #tpu.memory_space<vmem>>, vector<2x8x8xf32>
    %c0_5 = arith.constant 0 : index
    %c0_6 = arith.constant 0 : index
    %3 = vector.load %arg2[%c0_5, %c0_6] : memref<192x32xf32, #tpu.memory_space<vmem>>, vector<32x32xf32>
    %c32 = arith.constant 32 : index
    %c0_7 = arith.constant 0 : index
    %4 = vector.load %arg2[%c32, %c0_7] : memref<192x32xf32, #tpu.memory_space<vmem>>, vector<32x32xf32>
    %c64 = arith.constant 64 : index
    %c0_8 = arith.constant 0 : index
    %5 = vector.load %arg2[%c64, %c0_8] : memref<192x32xf32, #tpu.memory_space<vmem>>, vector<32x32xf32>
    %c96 = arith.constant 96 : index
    %c0_9 = arith.constant 0 : index
    %6 = vector.load %arg2[%c96, %c0_9] : memref<192x32xf32, #tpu.memory_space<vmem>>, vector<32x32xf32>
    %c128 = arith.constant 128 : index
    %c0_10 = arith.constant 0 : index
    %7 = vector.load %arg2[%c128, %c0_10] : memref<192x32xf32, #tpu.memory_space<vmem>>, vector<64x32xf32>
    %c0_11 = arith.constant 0 : index
    %c0_12 = arith.constant 0 : index
    %8 = vector.load %arg3[%c0_11, %c0_12] : memref<48x64xf32, #tpu.memory_space<vmem>>, vector<32x64xf32>
    %c32_13 = arith.constant 32 : index
    %c0_14 = arith.constant 0 : index
    %9 = vector.load %arg3[%c32_13, %c0_14] : memref<48x64xf32, #tpu.memory_space<vmem>>, vector<1x64xf32>
    %c33 = arith.constant 33 : index
    %c0_15 = arith.constant 0 : index
    %10 = vector.load %arg3[%c33, %c0_15] : memref<48x64xf32, #tpu.memory_space<vmem>>, vector<1x32xf32>
    %c34 = arith.constant 34 : index
    %c0_16 = arith.constant 0 : index
    %11 = vector.load %arg3[%c34, %c0_16] : memref<48x64xf32, #tpu.memory_space<vmem>>, vector<1x32xf32>
    %c35 = arith.constant 35 : index
    %c0_17 = arith.constant 0 : index
    %12 = vector.load %arg3[%c35, %c0_17] : memref<48x64xf32, #tpu.memory_space<vmem>>, vector<1x32xf32>
    %c36 = arith.constant 36 : index
    %c0_18 = arith.constant 0 : index
    %13 = vector.load %arg3[%c36, %c0_18] : memref<48x64xf32, #tpu.memory_space<vmem>>, vector<1x32xf32>
    %c37 = arith.constant 37 : index
    %c0_19 = arith.constant 0 : index
    %14 = vector.load %arg3[%c37, %c0_19] : memref<48x64xf32, #tpu.memory_space<vmem>>, vector<1x32xf32>
    %c38 = arith.constant 38 : index
    %c0_20 = arith.constant 0 : index
    %15 = vector.load %arg3[%c38, %c0_20] : memref<48x64xf32, #tpu.memory_space<vmem>>, vector<1x32xf32>
    %c39 = arith.constant 39 : index
    %c0_21 = arith.constant 0 : index
    %16 = vector.load %arg3[%c39, %c0_21] : memref<48x64xf32, #tpu.memory_space<vmem>>, vector<1x32xf32>
    %c40 = arith.constant 40 : index
    %c0_22 = arith.constant 0 : index
    %17 = vector.load %arg3[%c40, %c0_22] : memref<48x64xf32, #tpu.memory_space<vmem>>, vector<1x32xf32>
    %c41 = arith.constant 41 : index
    %c0_23 = arith.constant 0 : index
    %18 = vector.load %arg3[%c41, %c0_23] : memref<48x64xf32, #tpu.memory_space<vmem>>, vector<1x32xf32>
    %cst = arith.constant dense<0.000000e+00> : vector<16xf32>
    %19 = vector.multi_reduction <add>, %1, %cst [1] : vector<16x32xf32> to vector<16xf32>
    %20 = vector.shape_cast %19 : vector<16xf32> to vector<16x1xf32>
    %cst_24 = arith.constant 3.200000e+01 : f32
    %21 = vector.broadcast %cst_24 : f32 to vector<16x1xf32>
    %22 = arith.divf %20, %21 : vector<16x1xf32>
    %23 = vector.broadcast %22 : vector<16x1xf32> to vector<16x32xf32>
    %24 = arith.subf %1, %23 : vector<16x32xf32>
    %25 = arith.mulf %24, %24 : vector<16x32xf32>
    %cst_25 = arith.constant dense<0.000000e+00> : vector<16xf32>
    %26 = vector.multi_reduction <add>, %25, %cst_25 [1] : vector<16x32xf32> to vector<16xf32>
    %27 = vector.shape_cast %26 : vector<16xf32> to vector<16x1xf32>
    %cst_26 = arith.constant 3.100000e+01 : f32
    %28 = vector.broadcast %cst_26 : f32 to vector<16x1xf32>
    %29 = arith.divf %27, %28 : vector<16x1xf32>
    %30 = vector.broadcast %22 : vector<16x1xf32> to vector<16x32xf32>
    %31 = arith.subf %1, %30 : vector<16x32xf32>
    %32 = vector.broadcast %10 : vector<1x32xf32> to vector<16x32xf32>
    %33 = arith.mulf %32, %31 : vector<16x32xf32>
    %34 = math.sqrt %29 : vector<16x1xf32>
    %cst_27 = arith.constant 9.99999997E-7 : f32
    %35 = vector.broadcast %cst_27 : f32 to vector<16x1xf32>
    %36 = arith.addf %34, %35 : vector<16x1xf32>
    %37 = vector.broadcast %36 : vector<16x1xf32> to vector<16x32xf32>
    %38 = arith.divf %33, %37 : vector<16x32xf32>
    %39 = vector.broadcast %11 : vector<1x32xf32> to vector<16x32xf32>
    %40 = arith.addf %38, %39 : vector<16x32xf32>
    %cst_28 = arith.constant dense<0.000000e+00> : vector<16x32xf32>
    %41 = tpu.matmul %40, %3, %cst_28 {dimension_numbers = #tpu.dot_dimension_numbers<[1], [0], [0], [1], [0, 0, 1, 1], [], []>} : vector<16x32xf32>, vector<32x32xf32>, vector<16x32xf32> -> vector<16x32xf32>
    %42 = vector.broadcast %12 : vector<1x32xf32> to vector<16x32xf32>
    %43 = arith.addf %41, %42 : vector<16x32xf32>
    %cst_29 = arith.constant dense<0.000000e+00> : vector<16x32xf32>
    %44 = tpu.matmul %40, %4, %cst_29 {dimension_numbers = #tpu.dot_dimension_numbers<[1], [0], [0], [1], [0, 0, 1, 1], [], []>} : vector<16x32xf32>, vector<32x32xf32>, vector<16x32xf32> -> vector<16x32xf32>
    %45 = vector.broadcast %13 : vector<1x32xf32> to vector<16x32xf32>
    %46 = arith.addf %44, %45 : vector<16x32xf32>
    %47 = vector.shape_cast %46 : vector<16x32xf32> to vector<2x8x32xf32>
    %cst_30 = arith.constant dense<0.000000e+00> : vector<16x32xf32>
    %48 = tpu.matmul %40, %5, %cst_30 {dimension_numbers = #tpu.dot_dimension_numbers<[1], [0], [0], [1], [0, 0, 1, 1], [], []>} : vector<16x32xf32>, vector<32x32xf32>, vector<16x32xf32> -> vector<16x32xf32>
    %49 = vector.broadcast %14 : vector<1x32xf32> to vector<16x32xf32>
    %50 = arith.addf %48, %49 : vector<16x32xf32>
    %51 = vector.shape_cast %50 : vector<16x32xf32> to vector<2x8x32xf32>
    %cst_31 = arith.constant 0.000000e+00 : f32
    %52 = vector.broadcast %cst_31 : f32 to vector<2x8x32xf32>
    %c42 = arith.constant 42 : index
    %c0_32 = arith.constant 0 : index
    %53 = vector.load %arg3[%c42, %c0_32] : memref<48x64xf32, #tpu.memory_space<vmem>>, vector<1x32xf32>
    %54 = vector.broadcast %53 : vector<1x32xf32> to vector<16x32xf32>
    %55 = arith.mulf %43, %54 : vector<16x32xf32>
    %56 = vector.shape_cast %55 : vector<16x32xf32> to vector<2x8x32xf32>
    "tpu.trace_start"() <{level = 10 : i32, message = "bqd,bkd->bqk"}> : () -> ()
    %cst_33 = arith.constant dense<0.000000e+00> : vector<2x8x8xf32>
    %57 = tpu.matmul %56, %47, %cst_33 {dimension_numbers = #tpu.dot_dimension_numbers<[2], [2], [1], [1], [0, 0, 0, 1, 1, 1], [0], [0]>} : vector<2x8x32xf32>, vector<2x8x32xf32>, vector<2x8x8xf32> -> vector<2x8x8xf32>
    "tpu.trace_stop"() : () -> ()
    %58 = arith.addf %57, %2 : vector<2x8x8xf32>
    %cst_34 = arith.constant dense<0xFF800000> : vector<2x8xf32>
    %59 = vector.multi_reduction <maximumf>, %58, %cst_34 [2] : vector<2x8x8xf32> to vector<2x8xf32>
    %60 = vector.shape_cast %59 : vector<2x8xf32> to vector<2x8x1xf32>
    %61 = vector.broadcast %60 : vector<2x8x1xf32> to vector<2x8x8xf32>
    %62 = arith.subf %58, %61 : vector<2x8x8xf32>
    %63 = math.exp %62 : vector<2x8x8xf32>
    %cst_35 = arith.constant dense<0.000000e+00> : vector<2x8xf32>
    %64 = vector.multi_reduction <add>, %63, %cst_35 [2] : vector<2x8x8xf32> to vector<2x8xf32>
    %65 = vector.shape_cast %64 : vector<2x8xf32> to vector<2x8x1xf32>
    %66 = vector.broadcast %65 : vector<2x8x1xf32> to vector<2x8x8xf32>
    %67 = arith.divf %63, %66 : vector<2x8x8xf32>
    "tpu.trace_start"() <{level = 10 : i32, message = "bqk,bkd->bqd"}> : () -> ()
    %cst_36 = arith.constant dense<0.000000e+00> : vector<2x8x32xf32>
    %68 = tpu.matmul %67, %51, %cst_36 {dimension_numbers = #tpu.dot_dimension_numbers<[2], [1], [1], [2], [0, 0, 0, 1, 1, 2], [0], [0]>} : vector<2x8x8xf32>, vector<2x8x32xf32>, vector<2x8x32xf32> -> vector<2x8x32xf32>
    "tpu.trace_stop"() : () -> ()
    %69 = vector.shape_cast %53 : vector<1x32xf32> to vector<1x1x32xf32>
    %70 = vector.broadcast %69 : vector<1x1x32xf32> to vector<2x8x32xf32>
    %71 = arith.mulf %70, %68 : vector<2x8x32xf32>
    %72 = arith.addf %52, %71 : vector<2x8x32xf32>
    %c43 = arith.constant 43 : index
    %c0_37 = arith.constant 0 : index
    %73 = vector.load %arg3[%c43, %c0_37] : memref<48x64xf32, #tpu.memory_space<vmem>>, vector<1x32xf32>
    %74 = vector.broadcast %73 : vector<1x32xf32> to vector<16x32xf32>
    %75 = arith.mulf %43, %74 : vector<16x32xf32>
    %76 = vector.shape_cast %75 : vector<16x32xf32> to vector<2x8x32xf32>
    "tpu.trace_start"() <{level = 10 : i32, message = "bqd,bkd->bqk"}> : () -> ()
    %cst_38 = arith.constant dense<0.000000e+00> : vector<2x8x8xf32>
    %77 = tpu.matmul %76, %47, %cst_38 {dimension_numbers = #tpu.dot_dimension_numbers<[2], [2], [1], [1], [0, 0, 0, 1, 1, 1], [0], [0]>} : vector<2x8x32xf32>, vector<2x8x32xf32>, vector<2x8x8xf32> -> vector<2x8x8xf32>
    "tpu.trace_stop"() : () -> ()
    %78 = arith.addf %77, %2 : vector<2x8x8xf32>
    %cst_39 = arith.constant dense<0xFF800000> : vector<2x8xf32>
    %79 = vector.multi_reduction <maximumf>, %78, %cst_39 [2] : vector<2x8x8xf32> to vector<2x8xf32>
    %80 = vector.shape_cast %79 : vector<2x8xf32> to vector<2x8x1xf32>
    %81 = vector.broadcast %80 : vector<2x8x1xf32> to vector<2x8x8xf32>
    %82 = arith.subf %78, %81 : vector<2x8x8xf32>
    %83 = math.exp %82 : vector<2x8x8xf32>
    %cst_40 = arith.constant dense<0.000000e+00> : vector<2x8xf32>
    %84 = vector.multi_reduction <add>, %83, %cst_40 [2] : vector<2x8x8xf32> to vector<2x8xf32>
    %85 = vector.shape_cast %84 : vector<2x8xf32> to vector<2x8x1xf32>
    %86 = vector.broadcast %85 : vector<2x8x1xf32> to vector<2x8x8xf32>
    %87 = arith.divf %83, %86 : vector<2x8x8xf32>
    "tpu.trace_start"() <{level = 10 : i32, message = "bqk,bkd->bqd"}> : () -> ()
    %cst_41 = arith.constant dense<0.000000e+00> : vector<2x8x32xf32>
    %88 = tpu.matmul %87, %51, %cst_41 {dimension_numbers = #tpu.dot_dimension_numbers<[2], [1], [1], [2], [0, 0, 0, 1, 1, 2], [0], [0]>} : vector<2x8x8xf32>, vector<2x8x32xf32>, vector<2x8x32xf32> -> vector<2x8x32xf32>
    "tpu.trace_stop"() : () -> ()
    %89 = vector.shape_cast %73 : vector<1x32xf32> to vector<1x1x32xf32>
    %90 = vector.broadcast %89 : vector<1x1x32xf32> to vector<2x8x32xf32>
    %91 = arith.mulf %90, %88 : vector<2x8x32xf32>
    %92 = arith.addf %72, %91 : vector<2x8x32xf32>
    %c44 = arith.constant 44 : index
    %c0_42 = arith.constant 0 : index
    %93 = vector.load %arg3[%c44, %c0_42] : memref<48x64xf32, #tpu.memory_space<vmem>>, vector<1x32xf32>
    %94 = vector.broadcast %93 : vector<1x32xf32> to vector<16x32xf32>
    %95 = arith.mulf %43, %94 : vector<16x32xf32>
    %96 = vector.shape_cast %95 : vector<16x32xf32> to vector<2x8x32xf32>
    "tpu.trace_start"() <{level = 10 : i32, message = "bqd,bkd->bqk"}> : () -> ()
    %cst_43 = arith.constant dense<0.000000e+00> : vector<2x8x8xf32>
    %97 = tpu.matmul %96, %47, %cst_43 {dimension_numbers = #tpu.dot_dimension_numbers<[2], [2], [1], [1], [0, 0, 0, 1, 1, 1], [0], [0]>} : vector<2x8x32xf32>, vector<2x8x32xf32>, vector<2x8x8xf32> -> vector<2x8x8xf32>
    "tpu.trace_stop"() : () -> ()
    %98 = arith.addf %97, %2 : vector<2x8x8xf32>
    %cst_44 = arith.constant dense<0xFF800000> : vector<2x8xf32>
    %99 = vector.multi_reduction <maximumf>, %98, %cst_44 [2] : vector<2x8x8xf32> to vector<2x8xf32>
    %100 = vector.shape_cast %99 : vector<2x8xf32> to vector<2x8x1xf32>
    %101 = vector.broadcast %100 : vector<2x8x1xf32> to vector<2x8x8xf32>
    %102 = arith.subf %98, %101 : vector<2x8x8xf32>
    %103 = math.exp %102 : vector<2x8x8xf32>
    %cst_45 = arith.constant dense<0.000000e+00> : vector<2x8xf32>
    %104 = vector.multi_reduction <add>, %103, %cst_45 [2] : vector<2x8x8xf32> to vector<2x8xf32>
    %105 = vector.shape_cast %104 : vector<2x8xf32> to vector<2x8x1xf32>
    %106 = vector.broadcast %105 : vector<2x8x1xf32> to vector<2x8x8xf32>
    %107 = arith.divf %103, %106 : vector<2x8x8xf32>
    "tpu.trace_start"() <{level = 10 : i32, message = "bqk,bkd->bqd"}> : () -> ()
    %cst_46 = arith.constant dense<0.000000e+00> : vector<2x8x32xf32>
    %108 = tpu.matmul %107, %51, %cst_46 {dimension_numbers = #tpu.dot_dimension_numbers<[2], [1], [1], [2], [0, 0, 0, 1, 1, 2], [0], [0]>} : vector<2x8x8xf32>, vector<2x8x32xf32>, vector<2x8x32xf32> -> vector<2x8x32xf32>
    "tpu.trace_stop"() : () -> ()
    %109 = vector.shape_cast %93 : vector<1x32xf32> to vector<1x1x32xf32>
    %110 = vector.broadcast %109 : vector<1x1x32xf32> to vector<2x8x32xf32>
    %111 = arith.mulf %110, %108 : vector<2x8x32xf32>
    %112 = arith.addf %92, %111 : vector<2x8x32xf32>
    %c45 = arith.constant 45 : index
    %c0_47 = arith.constant 0 : index
    %113 = vector.load %arg3[%c45, %c0_47] : memref<48x64xf32, #tpu.memory_space<vmem>>, vector<1x32xf32>
    %114 = vector.broadcast %113 : vector<1x32xf32> to vector<16x32xf32>
    %115 = arith.mulf %43, %114 : vector<16x32xf32>
    %116 = vector.shape_cast %115 : vector<16x32xf32> to vector<2x8x32xf32>
    "tpu.trace_start"() <{level = 10 : i32, message = "bqd,bkd->bqk"}> : () -> ()
    %cst_48 = arith.constant dense<0.000000e+00> : vector<2x8x8xf32>
    %117 = tpu.matmul %116, %47, %cst_48 {dimension_numbers = #tpu.dot_dimension_numbers<[2], [2], [1], [1], [0, 0, 0, 1, 1, 1], [0], [0]>} : vector<2x8x32xf32>, vector<2x8x32xf32>, vector<2x8x8xf32> -> vector<2x8x8xf32>
    "tpu.trace_stop"() : () -> ()
    %118 = arith.addf %117, %2 : vector<2x8x8xf32>
    %cst_49 = arith.constant dense<0xFF800000> : vector<2x8xf32>
    %119 = vector.multi_reduction <maximumf>, %118, %cst_49 [2] : vector<2x8x8xf32> to vector<2x8xf32>
    %120 = vector.shape_cast %119 : vector<2x8xf32> to vector<2x8x1xf32>
    %121 = vector.broadcast %120 : vector<2x8x1xf32> to vector<2x8x8xf32>
    %122 = arith.subf %118, %121 : vector<2x8x8xf32>
    %123 = math.exp %122 : vector<2x8x8xf32>
    %cst_50 = arith.constant dense<0.000000e+00> : vector<2x8xf32>
    %124 = vector.multi_reduction <add>, %123, %cst_50 [2] : vector<2x8x8xf32> to vector<2x8xf32>
    %125 = vector.shape_cast %124 : vector<2x8xf32> to vector<2x8x1xf32>
    %126 = vector.broadcast %125 : vector<2x8x1xf32> to vector<2x8x8xf32>
    %127 = arith.divf %123, %126 : vector<2x8x8xf32>
    "tpu.trace_start"() <{level = 10 : i32, message = "bqk,bkd->bqd"}> : () -> ()
    %cst_51 = arith.constant dense<0.000000e+00> : vector<2x8x32xf32>
    %128 = tpu.matmul %127, %51, %cst_51 {dimension_numbers = #tpu.dot_dimension_numbers<[2], [1], [1], [2], [0, 0, 0, 1, 1, 2], [0], [0]>} : vector<2x8x8xf32>, vector<2x8x32xf32>, vector<2x8x32xf32> -> vector<2x8x32xf32>
    "tpu.trace_stop"() : () -> ()
    %129 = vector.shape_cast %113 : vector<1x32xf32> to vector<1x1x32xf32>
    %130 = vector.broadcast %129 : vector<1x1x32xf32> to vector<2x8x32xf32>
    %131 = arith.mulf %130, %128 : vector<2x8x32xf32>
    %132 = arith.addf %112, %131 : vector<2x8x32xf32>
    %133 = vector.shape_cast %132 : vector<2x8x32xf32> to vector<16x32xf32>
    %cst_52 = arith.constant dense<0.000000e+00> : vector<16x32xf32>
    %134 = tpu.matmul %133, %6, %cst_52 {dimension_numbers = #tpu.dot_dimension_numbers<[1], [0], [0], [1], [0, 0, 1, 1], [], []>} : vector<16x32xf32>, vector<32x32xf32>, vector<16x32xf32> -> vector<16x32xf32>
    %135 = vector.broadcast %15 : vector<1x32xf32> to vector<16x32xf32>
    %136 = arith.addf %134, %135 : vector<16x32xf32>
    %137 = arith.addf %1, %136 : vector<16x32xf32>
    %cst_53 = arith.constant dense<0.000000e+00> : vector<16xf32>
    %138 = vector.multi_reduction <add>, %137, %cst_53 [1] : vector<16x32xf32> to vector<16xf32>
    %139 = vector.shape_cast %138 : vector<16xf32> to vector<16x1xf32>
    %cst_54 = arith.constant 3.200000e+01 : f32
    %140 = vector.broadcast %cst_54 : f32 to vector<16x1xf32>
    %141 = arith.divf %139, %140 : vector<16x1xf32>
    %142 = vector.broadcast %141 : vector<16x1xf32> to vector<16x32xf32>
    %143 = arith.subf %137, %142 : vector<16x32xf32>
    %144 = arith.mulf %143, %143 : vector<16x32xf32>
    %cst_55 = arith.constant dense<0.000000e+00> : vector<16xf32>
    %145 = vector.multi_reduction <add>, %144, %cst_55 [1] : vector<16x32xf32> to vector<16xf32>
    %146 = vector.shape_cast %145 : vector<16xf32> to vector<16x1xf32>
    %cst_56 = arith.constant 3.100000e+01 : f32
    %147 = vector.broadcast %cst_56 : f32 to vector<16x1xf32>
    %148 = arith.divf %146, %147 : vector<16x1xf32>
    %149 = vector.broadcast %141 : vector<16x1xf32> to vector<16x32xf32>
    %150 = arith.subf %137, %149 : vector<16x32xf32>
    %151 = vector.broadcast %16 : vector<1x32xf32> to vector<16x32xf32>
    %152 = arith.mulf %151, %150 : vector<16x32xf32>
    %153 = math.sqrt %148 : vector<16x1xf32>
    %cst_57 = arith.constant 9.99999997E-7 : f32
    %154 = vector.broadcast %cst_57 : f32 to vector<16x1xf32>
    %155 = arith.addf %153, %154 : vector<16x1xf32>
    %156 = vector.broadcast %155 : vector<16x1xf32> to vector<16x32xf32>
    %157 = arith.divf %152, %156 : vector<16x32xf32>
    %158 = vector.broadcast %17 : vector<1x32xf32> to vector<16x32xf32>
    %159 = arith.addf %157, %158 : vector<16x32xf32>
    %cst_58 = arith.constant dense<0.000000e+00> : vector<16x64xf32>
    %160 = tpu.matmul %159, %8, %cst_58 {dimension_numbers = #tpu.dot_dimension_numbers<[1], [0], [0], [1], [0, 0, 1, 1], [], []>} : vector<16x32xf32>, vector<32x64xf32>, vector<16x64xf32> -> vector<16x64xf32>
    %161 = vector.broadcast %9 : vector<1x64xf32> to vector<16x64xf32>
    %162 = arith.addf %160, %161 : vector<16x64xf32>
    %cst_59 = arith.constant 0.000000e+00 : f32
    %163 = vector.broadcast %cst_59 : f32 to vector<16x64xf32>
    %164 = arith.maximumf %162, %163 : vector<16x64xf32>
    %cst_60 = arith.constant dense<0.000000e+00> : vector<16x32xf32>
    %165 = tpu.matmul %164, %7, %cst_60 {dimension_numbers = #tpu.dot_dimension_numbers<[1], [0], [0], [1], [0, 0, 1, 1], [], []>} : vector<16x64xf32>, vector<64x32xf32>, vector<16x32xf32> -> vector<16x32xf32>
    %166 = vector.broadcast %18 : vector<1x32xf32> to vector<16x32xf32>
    %167 = arith.addf %165, %166 : vector<16x32xf32>
    %168 = arith.addf %137, %167 : vector<16x32xf32>
    %169 = vector.shape_cast %168 : vector<16x32xf32> to vector<2x8x32xf32>
    %c0_61 = arith.constant 0 : index
    %c0_62 = arith.constant 0 : index
    %c0_63 = arith.constant 0 : index
    %170 = vector.load %arg4[%c0_61, %c0_62, %c0_63] : memref<2x8x32xf32, #tpu.memory_space<vmem>>, vector<2x8x32xf32>
    tpu.vector_store %arg4[%c0_61, %c0_62, %c0_63], %169 {strides = array<i32>} : memref<2x8x32xf32, #tpu.memory_space<vmem>>, vector<2x8x32xf32>,
    return
  }
}

</mosaic_0001>

<bundles_post_ra>
// kernel: tpu_custom_call.1
= control target key start
LH: loop header
LB: loop body
LE: loop exit
PB: predicated region body
PF: predicated region fallthrough
CT: control target
= control target key end

     0   :  { %vm60_vm0 = vcmask 261120   ;;  %s2719_s0 = inlined_call_operand.vmem [shape: f32[2,8,32], index: 0, kind: input, shape index: {}]   ;;  %s2720_s1 = inlined_call_operand.vmem [shape: f32[2,8,8], index: 1, kind: input, shape index: {}]   ;;  %s2721_s2 = inlined_call_operand.vmem [shape: f32[192,32], index: 2, kind: input, shape index: {}]   ;;  %s2722_s3 = inlined_call_operand.vmem [shape: f32[48,64], index: 3, kind: input, shape index: {}]   ;;  %s2723_s4 = inlined_call_operand.hbm [shape: f32[2,8,32], index: 4, kind: output, shape index: {}]  }
   0x1   :  { %v2381_v0 = vld [vmem:[%s2719_s0] sm:$0xff]  ;;  %v2386_v1 = vld [vmem:[%s2719_s0 + $0x8] sm:$0xff] }
   0x2   :  { %v61_v2 = vsel %vm60_vm0, %v2381_v0, 0.0 }
   0x3   :  { %9 = vsyncpa [#allocation3], 0  ;;  %62 = vadd.xlane.f32.xlu0 %v61_v2  ;;  %v64_v3 = vsel %vm60_vm0, %v2386_v1, 0.0  ;;  %v25_v14 = vld [vmem:[%s2721_s2 + $0x18] sm:$0xff]  ;;  %v24_v16 = vld [vmem:[%s2721_s2 + $0x10] sm:$0xff]  ;;  %v2348_v52 = vmov 0.0  }
   0x4   :  { %v33_v15 = vld [vmem:[%s2721_s2 + $0x58] sm:$0xff]  ;;  %2119 = vmatprep.subr.mxu1 %v25_v14  ;;  %v32_v17 = vld [vmem:[%s2721_s2 + $0x50] sm:$0xff]  ;;  %v23_v18 = vld [vmem:[%s2721_s2 + $0x8] sm:$0xff]  ;;  %vm2349_vm5 = vmmov 0   ;;  %vm517_vm6 = vcmask 64512   ;;  %vm1895_vm11 = vcmask 523264  }
   0x5   :  { %2141 = vmatprep.subr.mxu0 %v33_v15  ;;  %2120 = vmatpush3.msra.mxu1 %v25_v14  ;;  %v31_v19 = vld [vmem:[%s2721_s2 + $0x48] sm:$0xff]  ;;  %v22_v20 = vld [vmem:[%s2721_s2] sm:$0xff]  ;;  %v29_v22 = vld [vmem:[%s2721_s2 + $0x38] sm:$0xff] }
   0x6   :  { %2142 = vmatpush3.msra.mxu0 %v33_v15  ;;  %2121 = vmatprep.subr.mxu1 %v24_v16  ;;  %v30_v21 = vld [vmem:[%s2721_s2 + $0x40] sm:$0xff]  ;;  %v28_v49 = vld [vmem:[%s2721_s2 + $0x30] sm:$0xff]  ;;  %v27_v50 = vld [vmem:[%s2721_s2 + $0x28] sm:$0xff] }
   0x7   :  { %65 = vadd.xlane.f32.xlu0 %v64_v3  ;;  %2143 = vmatprep.subr.mxu0 %v32_v17  ;;  %v1997_v39 = vld [vmem:[%s2722_s3 + $0x21] ss:$0 sm:$0xff]  ;;  %v1998_v42 = vld [vmem:[%s2722_s3 + $0x22] ss:$0 sm:$0xff]  ;;  %v2005_v56 = vld [vmem:[%s2722_s3 + $0x25] ss:$0 sm:$0xff] }
   0x8   :  { %2122 = vmatpush3.msra.mxu1 %v24_v16  ;;  %2144 = vmatpush3.msra.mxu0 %v32_v17  ;;  %v26_v51 = vld [vmem:[%s2721_s2 + $0x20] sm:$0xff]  ;;  %v2470_v3 = vld [vmem:[%s2722_s3 + $0x2a] ss:$0 sm:$0xff] }
   0x9   :  { %2123 = vmatprep.subr.mxu1 %v23_v18  ;;  %2145 = vmatprep.subr.mxu0 %v31_v19  ;;  %v1999_v60 = vld [vmem:[%s2722_s3 + $0x23] ss:$0 sm:$0xff]  ;;  %v2002_v62 = vld [vmem:[%s2722_s3 + $0x24] ss:$0 sm:$0xff] }
   0xa   :  { %2124 = vmatpush3.msra.mxu1 %v23_v18  ;;  %2146 = vmatpush3.msra.mxu0 %v31_v19 }
   0xb   :  { %2125 = vmatprep.subr.mxu1 %v22_v20  ;;  %2147 = vmatprep.subr.mxu0 %v30_v21 }
   0xc   :  { %2126 = vmatpush3.msra.mxu1 %v22_v20  ;;  %2148 = vmatpush3.msra.mxu0 %v30_v21 }
   0xd   :  { %2130 = vmatprep.subr.mxu1 %v29_v22  ;;  %2162 = vmatprep.subr.mxu0 %v2348_v52 }
  0x8c   :  { %v63_v4 = vpop.xlane.xlu0 %62 }
  0x8d   :  { %v68_v5 = vmul.f32 0.03125, %v63_v4 }
  0x8f   :  { %v70_v6 = vsub.f32 %v2381_v0, %v68_v5 }
  0x90   :  { %v66_v7 = vpop.xlane.xlu0 %65 }
  0x91   :  { %v69_v8 = vmul.f32 0.03125, %v66_v7  ;;  %v72_v9 = vmul.f32 %v70_v6, %v70_v6  ;;  %v87_v40 = vmul.f32 %v1997_v39, %v70_v6 }
  0x93   :  { %v71_v10 = vsub.f32 %v2386_v1, %v69_v8  ;;  %v74_v11 = vsel %vm60_vm0, %v72_v9, 0.0  ;;  %v2499_v9 = vld [vmem:[%s2720_s1] sm:$0xff] }
  0x94   :  { %75 = vadd.xlane.f32.xlu1 %v74_v11 }
  0x95   :  { %v73_v12 = vmul.f32 %v71_v10, %v71_v10  ;;  %v88_v44 = vmul.f32 %v1997_v39, %v71_v10 }
  0x97   :  { %v77_v13 = vsel %vm60_vm0, %v73_v12, 0.0 }
  0x98   :  { %78 = vadd.xlane.f32.xlu1 %v77_v13  ;;  %v2505_v13 = vld [vmem:[%s2720_s1 + $0x8] sm:$0xff] }
 0x11d   :  { %v76_v23 = vpop.xlane.xlu1 %75 }
 0x11e   :  { %v81_v24 = vmul.f32 0.032258064, %v76_v23 }
 0x120   :  { %2278 = vrsqrt.f32 %v81_v24  ;;  %vm91_vm1 = vcmp.eq.f32.partialorder %v81_v24, inf  ;;  %v94_v29 = vand.u32 2147483648, %v81_v24  ;;  %vm93_vm2 = vcmp.eq.f32.partialorder %v81_v24, 0.0 }
 0x121   :  { %v79_v25 = vpop.xlane.xlu1 %78 }
 0x122   :  { %v82_v26 = vmul.f32 0.032258064, %v79_v25 }
 0x124   :  { %2280 = vrsqrt.f32 %v82_v26  ;;  %vm98_vm3 = vcmp.eq.f32.partialorder %v82_v26, inf  ;;  %v101_v35 = vand.u32 2147483648, %v82_v26  ;;  %vm100_vm4 = vcmp.eq.f32.partialorder %v82_v26, 0.0 }
 0x12d   :  { %v2279_v27 = vpop.eup %2278 }
 0x12e   :  { %v90_v28 = vmul.f32 %v2279_v27, %v81_v24 }
 0x130   :  { %v92_v30 = vsel %vm91_vm1, %v81_v24, %v90_v28 }
 0x131   :  { %v2281_v31 = vpop.eup %2280  ;;  %v95_v32 = vsel %vm93_vm2, %v94_v29, %v92_v30 }
 0x132   :  { %v97_v33 = vmul.f32 %v2281_v31, %v82_v26  ;;  %v103_v34 = vadd.f32 1e-06, %v95_v32 }
 0x134   :  { %v99_v36 = vsel %vm98_vm3, %v82_v26, %v97_v33  ;;  %2282 = vrcp.f32 %v103_v34  ;;  %v2516_v34 = vld [vmem:[%s2722_s3 + $0x2b] ss:$0 sm:$0xff] }
 0x135   :  { %v102_v37 = vsel %vm100_vm4, %v101_v35, %v99_v36 }
 0x136   :  { %v104_v38 = vadd.f32 1e-06, %v102_v37 }
 0x138   :  { %2284 = vrcp.f32 %v104_v38 }
 0x141   :  { %v2283_v41 = vpop.eup %2282 }
 0x142   :  { %v106_v43 = vmul.f32 %v2283_v41, %v87_v40 }
 0x144   :  { %v113_v45 = vadd.f32 %v1998_v42, %v106_v43 }
 0x145   :  { %v2285_v46 = vpop.eup %2284 }
 0x146   :  { %v108_v47 = vmul.f32 %v2285_v46, %v88_v44  ;;  %2127 = vmatprep.mubr.msk.f32.mxu1 %vm60_vm0, %v113_v45  ;;  %2149 = vmatprep.mubr.msk.f32.mxu0 %vm60_vm0, %v113_v45 }
 0x148   :  { %v114_v48 = vadd.f32 %v1998_v42, %v108_v47 }
 0x14a   :  { %2128 = vmatmul.mubr.msk.f32.vlgmr.msra.gmra.mxu1 %vm60_vm0, %v114_v48  ;;  %2150 = vmatmul.mubr.msk.f32.vlgmr.msra.gmra.mxu0 %vm60_vm0, %v114_v48 }
 0x14b   :  { %2131 = vmatpush3.msra.mxu1 %v29_v22  ;;  %2138 = vmatprep.mubr.msk.f32.mxu1 %vm60_vm0, %v113_v45 }
 0x14c   :  { %2132 = vmatprep.subr.mxu1 %v28_v49  ;;  %2164 = vmatprep.mubr.msk.f32.mxu0 %vm2349_vm5, %v2348_v52 }
 0x14d   :  { %2133 = vmatpush3.msra.mxu1 %v28_v49 }
 0x14e   :  { %2134 = vmatprep.subr.mxu1 %v27_v50 }
 0x14f   :  { %2135 = vmatpush3.msra.mxu1 %v27_v50 }
 0x150   :  { %2136 = vmatprep.subr.mxu1 %v26_v51 }
 0x151   :  { %2137 = vmatpush3.msra.mxu1 %v26_v51 }
 0x152   :  { %2139 = vmatmul.mubr.msk.f32.vlgmr.msra.gmra.mxu1 %vm60_vm0, %v114_v48  ;;  %2152 = vmatprep.subr.mxu1 %v2348_v52 }
 0x153   :  { %2154 = vmatprep.mubr.msk.f32.mxu1 %vm2349_vm5, %v2348_v52 }
 0x20a   :  { %v2151_v53 = vpop.f32.mrf.mxu0  ;;  %v2129_v54 = vpop.f32.mrf.mxu1 }
 0x20b   :  { %v2474_v4 = vadd.f32 %v2129_v54, %v1999_v60  ;;  %v2489_v8 = vadd.f32 %v2151_v53, %v2005_v56 }
 0x20c   :  { %v349_v55 = vpop.f32.mrf.mxu0  ;;  %v191_v58 = vpop.f32.mrf.mxu1 }
 0x20d   :  { %v2453_v57 = vadd.f32 %v2005_v56, %v349_v55  ;;  %v2460_v61 = vadd.f32 %v1999_v60, %v191_v58  ;;  %v364_v7 = vmul.f32 %v2470_v3, %v2474_v4  ;;  %v696_v37 = vmul.f32 %v2516_v34, %v2474_v4 }
 0x20f   :  { %2163 = vmatpush3.msra.mxu0 %v2453_v57  ;;  %v363_v5 = vmul.f32 %v2470_v3, %v2460_v61  ;;  %v695_v35 = vmul.f32 %v2516_v34, %v2460_v61 }
 0x210   :  { %2172 = vmatprep.subr.mxu0 %v2348_v52 }
 0x212   :  { %v2140_v59 = vpop.f32.mrf.mxu1 }
 0x213   :  { %v2479_v6 = vadd.f32 %v2140_v59, %v2002_v62 }
 0x214   :  { %v270_v63 = vpop.f32.mrf.mxu1 }
 0x215   :  { %v2465_v2 = vadd.f32 %v2002_v62, %v270_v63 }
 0x217   :  { %2153 = vmatpush3.xpose.msk.msra.mxu1 %vm60_vm0, %v2465_v2 }
 0x218   :  { %2157 = vmatprep.subr.mxu1 %v2348_v52 }
 0x21a   :  { %2155 = vmatmul.mubr.msk.f32.vlgmr.msra.gmra.mxu1 %vm60_vm0, %v363_v5 }
 0x21b   :  { %2158 = vmatpush3.xpose.msk.msra.mxu1 %vm60_vm0, %v2479_v6  ;;  %2159 = vmatprep.mubr.msk.f32.mxu1 %vm2349_vm5, %v2348_v52 }
 0x21c   :  { %2167 = vmatprep.subr.mxu1 %v2348_v52 }
 0x21e   :  { %2160 = vmatmul.mubr.msk.f32.vlgmr.msra.gmra.mxu1 %vm60_vm0, %v364_v7 }
 0x21f   :  { %2168 = vmatpush3.msra.mxu1 %v2489_v8  ;;  %2169 = vmatprep.mubr.msk.f32.mxu1 %vm2349_vm5, %v2348_v52 }
 0x220   :  { %2177 = vmatprep.subr.mxu1 %v2348_v52 }
 0x2da   :  { %v437_v10 = vpop.f32.mrf.mxu1 }
 0x2db   :  { %v438_v11 = vadd.f32 %v437_v10, %v2499_v9 }
 0x2dc   :  { %v2156_v12 = vpop.f32.mrf.mxu1 }
 0x2dd   :  { %v518_v14 = vsel %vm517_vm6, %v438_v11, -inf  ;;  %v2553_v12 = vld [vmem:[%s2722_s3 + $0x2c] ss:$0 sm:$0xff] }
 0x2de   :  { %519 = vmax.xlane.f32.xlu0 %v518_v14  ;;  %v513_v15 = vpop.f32.mrf.mxu1  ;;  %v1020_v14 = vmul.f32 %v2553_v12, %v2460_v61 }
 0x2df   :  { %v514_v16 = vadd.f32 %v513_v15, %v2505_v13 }
 0x2e0   :  { %v2161_v17 = vpop.f32.mrf.mxu1 }
 0x2e1   :  { %v521_v18 = vsel %vm517_vm6, %v514_v16, -inf }
 0x2e2   :  { %522 = vmax.xlane.f32.xlu1 %v521_v18 }
 0x367   :  { %v520_v19 = vpop.xlane.xlu0 %519 }
 0x368   :  { %v524_v20 = vsub.f32 %v438_v11, %v520_v19 }
 0x36a   :  { %v526_v21 = vmul.f32 1.442695, %v524_v20 }
 0x36b   :  { %v523_v22 = vpop.xlane.xlu1 %522 }
 0x36c   :  { %2286 = vpow2.f32 %v526_v21  ;;  %v525_v23 = vsub.f32 %v514_v16, %v523_v22  ;;  %v1021_v16 = vmul.f32 %v2553_v12, %v2474_v4 }
 0x36e   :  { %v528_v24 = vmul.f32 1.442695, %v525_v23 }
 0x370   :  { %2288 = vpow2.f32 %v528_v24 }
 0x379   :  { %v2287_v25 = vpop.eup %2286 }
 0x37a   :  { %v530_v26 = vsel %vm517_vm6, %v2287_v25, 0.0 }
 0x37b   :  { %531 = vadd.xlane.f32.xlu0 %v530_v26 }
 0x37d   :  { %v2289_v27 = vpop.eup %2288 }
 0x37e   :  { %v533_v28 = vsel %vm517_vm6, %v2289_v27, 0.0 }
 0x37f   :  { %534 = vadd.xlane.f32.xlu1 %v533_v28 }
 0x404   :  { %v532_v29 = vpop.xlane.xlu0 %531 }
 0x405   :  { %2290 = vrcp.f32 %v532_v29 }
 0x408   :  { %v535_v30 = vpop.xlane.xlu1 %534 }
 0x409   :  { %2292 = vrcp.f32 %v535_v30 }
 0x412   :  { %v2291_v31 = vpop.eup %2290 }
 0x413   :  { %v537_v32 = vmul.f32 %v2291_v31, %v2287_v25 }
 0x415   :  { %2165 = vmatmul.mubr.msk.f32.vlgmr.msra.gmra.mxu0 %vm517_vm6, %v537_v32 }
 0x416   :  { %v2293_v33 = vpop.eup %2292  ;;  %2173 = vmatpush3.xpose.msk.msra.mxu0 %vm60_vm0, %v2465_v2  ;;  %2174 = vmatprep.mubr.msk.f32.mxu0 %vm2349_vm5, %v2348_v52 }
 0x417   :  { %2182 = vmatprep.subr.mxu0 %v2348_v52  ;;  %v539_v36 = vmul.f32 %v2293_v33, %v2289_v27 }
 0x419   :  { %2170 = vmatmul.mubr.msk.f32.vlgmr.msra.gmra.mxu1 %vm517_vm6, %v539_v36  ;;  %2175 = vmatmul.mubr.msk.f32.vlgmr.msra.gmra.mxu0 %vm60_vm0, %v695_v35 }
 0x41a   :  { %2178 = vmatpush3.xpose.msk.msra.mxu1 %vm60_vm0, %v2479_v6  ;;  %2183 = vmatpush3.msra.mxu0 %v2453_v57 }
 0x41b   :  { %2179 = vmatprep.mubr.msk.f32.mxu1 %vm2349_vm5, %v2348_v52  ;;  %2187 = vmatprep.subr.mxu1 %v2348_v52 }
 0x41c   :  { %2184 = vmatprep.mubr.msk.f32.mxu0 %vm2349_vm5, %v2348_v52  ;;  %2192 = vmatprep.subr.mxu0 %v2348_v52 }
 0x41d   :  { %2180 = vmatmul.mubr.msk.f32.vlgmr.msra.gmra.mxu1 %vm60_vm0, %v696_v37 }
 0x41e   :  { %2188 = vmatpush3.msra.mxu1 %v2489_v8  ;;  %2189 = vmatprep.mubr.msk.f32.mxu1 %vm2349_vm5, %v2348_v52 }
 0x41f   :  { %2197 = vmatprep.subr.mxu1 %v2348_v52 }
 0x4d5   :  { %v609_v38 = vpop.f32.mrf.mxu0 }
 0x4d6   :  { %v686_v18 = vmul.f32 %v2470_v3, %v609_v38 }
 0x4d7   :  { %v2166_v39 = vpop.f32.mrf.mxu0 }
 0x4d9   :  { %v682_v40 = vpop.f32.mrf.mxu1  ;;  %v766_v41 = vpop.f32.mrf.mxu0 }
 0x4da   :  { %v767_v42 = vadd.f32 %v766_v41, %v2499_v9  ;;  %v687_v24 = vmul.f32 %v2470_v3, %v682_v40 }
 0x4db   :  { %v2171_v43 = vpop.f32.mrf.mxu1  ;;  %v2176_v44 = vpop.f32.mrf.mxu0 }
 0x4dc   :  { %v843_v45 = vsel %vm517_vm6, %v767_v42, -inf }
 0x4dd   :  { %844 = vmax.xlane.f32.xlu0 %v843_v45  ;;  %v839_v46 = vpop.f32.mrf.mxu1 }
 0x4de   :  { %v840_v47 = vadd.f32 %v839_v46, %v2505_v13 }
 0x4df   :  { %v2181_v48 = vpop.f32.mrf.mxu1 }
 0x4e0   :  { %v846_v49 = vsel %vm517_vm6, %v840_v47, -inf }
 0x4e1   :  { %847 = vmax.xlane.f32.xlu1 %v846_v49  ;;  %v2594_v49 = vld [vmem:[%s2722_s3 + $0x2d] ss:$0 sm:$0xff] }
 0x566   :  { %v845_v50 = vpop.xlane.xlu0 %844 }
 0x567   :  { %v849_v51 = vsub.f32 %v767_v42, %v845_v50  ;;  %v1345_v50 = vmul.f32 %v2594_v49, %v2460_v61 }
 0x569   :  { %v851_v53 = vmul.f32 1.442695, %v849_v51 }
 0x56a   :  { %v848_v54 = vpop.xlane.xlu1 %847 }
 0x56b   :  { %2294 = vpow2.f32 %v851_v53  ;;  %v850_v55 = vsub.f32 %v840_v47, %v848_v54 }
 0x56d   :  { %v853_v56 = vmul.f32 1.442695, %v850_v55 }
 0x56f   :  { %2296 = vpow2.f32 %v853_v56 }
 0x578   :  { %v2295_v58 = vpop.eup %2294 }
 0x579   :  { %v855_v59 = vsel %vm517_vm6, %v2295_v58, 0.0 }
 0x57a   :  { %856 = vadd.xlane.f32.xlu0 %v855_v59 }
 0x57c   :  { %v2297_v60 = vpop.eup %2296 }
 0x57d   :  { %v858_v62 = vsel %vm517_vm6, %v2297_v60, 0.0 }
 0x57e   :  { %859 = vadd.xlane.f32.xlu1 %v858_v62 }
 0x603   :  { %v857_v63 = vpop.xlane.xlu0 %856 }
 0x604   :  { %2298 = vrcp.f32 %v857_v63 }
 0x607   :  { %v860_v5 = vpop.xlane.xlu1 %859 }
 0x608   :  { %2300 = vrcp.f32 %v860_v5 }
 0x611   :  { %v2299_v7 = vpop.eup %2298 }
 0x612   :  { %v862_v10 = vmul.f32 %v2299_v7, %v2295_v58 }
 0x614   :  { %2185 = vmatmul.mubr.msk.f32.vlgmr.msra.gmra.mxu0 %vm517_vm6, %v862_v10 }
 0x615   :  { %v2301_v11 = vpop.eup %2300  ;;  %2193 = vmatpush3.xpose.msk.msra.mxu0 %vm60_vm0, %v2465_v2  ;;  %2194 = vmatprep.mubr.msk.f32.mxu0 %vm2349_vm5, %v2348_v52 }
 0x616   :  { %2202 = vmatprep.subr.mxu0 %v2348_v52  ;;  %v864_v15 = vmul.f32 %v2301_v11, %v2297_v60 }
 0x618   :  { %2190 = vmatmul.mubr.msk.f32.vlgmr.msra.gmra.mxu1 %vm517_vm6, %v864_v15  ;;  %2195 = vmatmul.mubr.msk.f32.vlgmr.msra.gmra.mxu0 %vm60_vm0, %v1020_v14 }
 0x619   :  { %2198 = vmatpush3.xpose.msk.msra.mxu1 %vm60_vm0, %v2479_v6  ;;  %2203 = vmatpush3.msra.mxu0 %v2453_v57 }
 0x61a   :  { %2199 = vmatprep.mubr.msk.f32.mxu1 %vm2349_vm5, %v2348_v52  ;;  %2207 = vmatprep.subr.mxu1 %v2348_v52 }
 0x61b   :  { %2204 = vmatprep.mubr.msk.f32.mxu0 %vm2349_vm5, %v2348_v52  ;;  %2212 = vmatprep.subr.mxu0 %v2348_v52 }
 0x61c   :  { %2200 = vmatmul.mubr.msk.f32.vlgmr.msra.gmra.mxu1 %vm60_vm0, %v1021_v16 }
 0x61d   :  { %2208 = vmatpush3.msra.mxu1 %v2489_v8  ;;  %2209 = vmatprep.mubr.msk.f32.mxu1 %vm2349_vm5, %v2348_v52 }
 0x61e   :  { %2217 = vmatprep.subr.mxu1 %v2348_v52 }
 0x6d4   :  { %v934_v17 = vpop.f32.mrf.mxu0 }
 0x6d5   :  { %v1011_v19 = vmul.f32 %v2516_v34, %v934_v17 }
 0x6d6   :  { %v2186_v20 = vpop.f32.mrf.mxu0 }
 0x6d7   :  { %v1013_v21 = vadd.f32 %v1011_v19, %v686_v18 }
 0x6d8   :  { %v1007_v22 = vpop.f32.mrf.mxu1  ;;  %v1091_v23 = vpop.f32.mrf.mxu0 }
 0x6d9   :  { %v1012_v25 = vmul.f32 %v2516_v34, %v1007_v22  ;;  %v1092_v26 = vadd.f32 %v1091_v23, %v2499_v9 }
 0x6da   :  { %v2191_v27 = vpop.f32.mrf.mxu1  ;;  %v2196_v28 = vpop.f32.mrf.mxu0 }
 0x6db   :  { %v1014_v29 = vadd.f32 %v1012_v25, %v687_v24  ;;  %v1168_v30 = vsel %vm517_vm6, %v1092_v26, -inf  ;;  %v37_v24 = vld [vmem:[%s2721_s2 + $0x78] sm:$0xff]  ;;  %v36_v25 = vld [vmem:[%s2721_s2 + $0x70] sm:$0xff]  ;;  %v34_v27 = vld [vmem:[%s2721_s2 + $0x60] sm:$0xff] }
 0x6dc   :  { %1169 = vmax.xlane.f32.xlu0 %v1168_v30  ;;  %v1164_v31 = vpop.f32.mrf.mxu1 }
 0x6dd   :  { %v1165_v32 = vadd.f32 %v1164_v31, %v2505_v13 }
 0x6de   :  { %v2201_v33 = vpop.f32.mrf.mxu1 }
 0x6df   :  { %v1171_v35 = vsel %vm517_vm6, %v1165_v32, -inf }
 0x6e0   :  { %1172 = vmax.xlane.f32.xlu1 %v1171_v35 }
 0x765   :  { %v1170_v36 = vpop.xlane.xlu0 %1169 }
 0x766   :  { %v1174_v37 = vsub.f32 %v1092_v26, %v1170_v36  ;;  %v35_v26 = vld [vmem:[%s2721_s2 + $0x68] sm:$0xff] }
 0x768   :  { %v1176_v3 = vmul.f32 1.442695, %v1174_v37  ;;  %v2036_v37 = vld [vmem:[%s2722_s3 + $0x26] ss:$0 sm:$0xff] }
 0x769   :  { %v1173_v38 = vpop.xlane.xlu1 %1172 }
 0x76a   :  { %2302 = vpow2.f32 %v1176_v3  ;;  %v1175_v34 = vsub.f32 %v1165_v32, %v1173_v38 }
 0x76c   :  { %v1178_v39 = vmul.f32 1.442695, %v1175_v34 }
 0x76e   :  { %2304 = vpow2.f32 %v1178_v39 }
 0x777   :  { %v2303_v40 = vpop.eup %2302 }
 0x778   :  { %v1180_v41 = vsel %vm517_vm6, %v2303_v40, 0.0 }
 0x779   :  { %1181 = vadd.xlane.f32.xlu0 %v1180_v41 }
 0x77b   :  { %v2305_v42 = vpop.eup %2304 }
 0x77c   :  { %v1183_v43 = vsel %vm517_vm6, %v2305_v42, 0.0 }
 0x77d   :  { %1184 = vadd.xlane.f32.xlu1 %v1183_v43 }
 0x802   :  { %v1182_v44 = vpop.xlane.xlu0 %1181 }
 0x803   :  { %2306 = vrcp.f32 %v1182_v44 }
 0x806   :  { %v1185_v45 = vpop.xlane.xlu1 %1184 }
 0x807   :  { %2308 = vrcp.f32 %v1185_v45 }
 0x810   :  { %v2307_v46 = vpop.eup %2306 }
 0x811   :  { %v1187_v47 = vmul.f32 %v2307_v46, %v2303_v40 }
 0x813   :  { %2205 = vmatmul.mubr.msk.f32.vlgmr.msra.gmra.mxu0 %vm517_vm6, %v1187_v47 }
 0x814   :  { %v2309_v48 = vpop.eup %2308  ;;  %2213 = vmatpush3.xpose.msk.msra.mxu0 %vm60_vm0, %v2465_v2  ;;  %2214 = vmatprep.mubr.msk.f32.mxu0 %vm2349_vm5, %v2348_v52  ;;  %v1346_v2 = vmul.f32 %v2594_v49, %v2474_v4 }
 0x815   :  { %2222 = vmatprep.subr.mxu0 %v2348_v52  ;;  %v1189_v51 = vmul.f32 %v2309_v48, %v2305_v42 }
 0x817   :  { %2210 = vmatmul.mubr.msk.f32.vlgmr.msra.gmra.mxu1 %vm517_vm6, %v1189_v51  ;;  %2215 = vmatmul.mubr.msk.f32.vlgmr.msra.gmra.mxu0 %vm60_vm0, %v1345_v50 }
 0x818   :  { %2218 = vmatpush3.xpose.msk.msra.mxu1 %vm60_vm0, %v2479_v6  ;;  %2223 = vmatpush3.msra.mxu0 %v2453_v57 }
 0x819   :  { %2219 = vmatprep.mubr.msk.f32.mxu1 %vm2349_vm5, %v2348_v52  ;;  %2227 = vmatprep.subr.mxu1 %v2348_v52 }
 0x81a   :  { %2224 = vmatprep.mubr.msk.f32.mxu0 %vm2349_vm5, %v2348_v52  ;;  %2232 = vmatprep.subr.mxu0 %v37_v24 }
 0x81b   :  { %2220 = vmatmul.mubr.msk.f32.vlgmr.msra.gmra.mxu1 %vm60_vm0, %v1346_v2  ;;  %v49_v2 = vld [vmem:[%s2722_s3 + $0x18] sm:$0xff] }
 0x81c   :  { %2228 = vmatpush3.msra.mxu1 %v2489_v8  ;;  %2229 = vmatprep.mubr.msk.f32.mxu1 %vm2349_vm5, %v2348_v52 }
 0x81d   :  { %2243 = vmatprep.subr.mxu1 %v49_v2 }
 0x8d3   :  { %v1259_v61 = vpop.f32.mrf.mxu0 }
 0x8d4   :  { %v1336_v57 = vmul.f32 %v2553_v12, %v1259_v61  ;;  %v48_v61 = vld [vmem:[%s2722_s3 + $0x10] sm:$0xff] }
 0x8d5   :  { %v2206_v6 = vpop.f32.mrf.mxu0 }
 0x8d6   :  { %v1338_v4 = vadd.f32 %v1336_v57, %v1013_v21  ;;  %v47_v57 = vld [vmem:[%s2722_s3 + $0x8] sm:$0xff]  ;;  %v46_v6 = vld [vmem:[%s2722_s3] sm:$0xff] }
 0x8d7   :  { %v1332_v53 = vpop.f32.mrf.mxu1  ;;  %v1416_v54 = vpop.f32.mrf.mxu0 }
 0x8d8   :  { %v1337_v55 = vmul.f32 %v2553_v12, %v1332_v53  ;;  %v1417_v56 = vadd.f32 %v1416_v54, %v2499_v9  ;;  %v44_v53 = vld [vmem:[%s2721_s2 + $0xb0] sm:$0xff]  ;;  %v43_v54 = vld [vmem:[%s2721_s2 + $0xa8] sm:$0xff] }
 0x8d9   :  { %v2211_v58 = vpop.f32.mrf.mxu1  ;;  %v2216_v59 = vpop.f32.mrf.mxu0 }
 0x8da   :  { %v1339_v60 = vadd.f32 %v1337_v55, %v1014_v29  ;;  %v1493_v62 = vsel %vm517_vm6, %v1417_v56, -inf  ;;  %v42_v55 = vld [vmem:[%s2721_s2 + $0xa0] sm:$0xff] }
 0x8db   :  { %1494 = vmax.xlane.f32.xlu0 %v1493_v62  ;;  %v1489_v8 = vpop.f32.mrf.mxu1 }
 0x8dc   :  { %v1490_v52 = vadd.f32 %v1489_v8, %v2505_v13 }
 0x8dd   :  { %v2221_v63 = vpop.f32.mrf.mxu1 }
 0x8de   :  { %v1496_v5 = vsel %vm517_vm6, %v1490_v52, -inf }
 0x8df   :  { %1497 = vmax.xlane.f32.xlu1 %v1496_v5 }
 0x964   :  { %v1495_v7 = vpop.xlane.xlu0 %1494 }
 0x965   :  { %v1499_v10 = vsub.f32 %v1417_v56, %v1495_v7 }
 0x967   :  { %v1501_v11 = vmul.f32 1.442695, %v1499_v10 }
 0x968   :  { %v1498_v14 = vpop.xlane.xlu1 %1497 }
 0x969   :  { %2310 = vpow2.f32 %v1501_v11  ;;  %v1500_v12 = vsub.f32 %v1490_v52, %v1498_v14 }
 0x96b   :  { %v1503_v9 = vmul.f32 1.442695, %v1500_v12 }
 0x96d   :  { %2312 = vpow2.f32 %v1503_v9 }
 0x976   :  { %v2311_v15 = vpop.eup %2310 }
 0x977   :  { %v1505_v16 = vsel %vm517_vm6, %v2311_v15, 0.0 }
 0x978   :  { %1506 = vadd.xlane.f32.xlu0 %v1505_v16  ;;  %v2039_v16 = vld [vmem:[%s2722_s3 + $0x27] ss:$0 sm:$0xff] }
 0x97a   :  { %v2313_v17 = vpop.eup %2312 }
 0x97b   :  { %v1508_v18 = vsel %vm517_vm6, %v2313_v17, 0.0 }
 0x97c   :  { %1509 = vadd.xlane.f32.xlu1 %v1508_v18 }
 0xa01   :  { %v1507_v13 = vpop.xlane.xlu0 %1506 }
 0xa02   :  { %2314 = vrcp.f32 %v1507_v13 }
 0xa05   :  { %v1510_v19 = vpop.xlane.xlu1 %1509 }
 0xa06   :  { %2316 = vrcp.f32 %v1510_v19 }
 0xa0f   :  { %v2315_v20 = vpop.eup %2314 }
 0xa10   :  { %v1512_v21 = vmul.f32 %v2315_v20, %v2311_v15 }
 0xa12   :  { %2225 = vmatmul.mubr.msk.f32.vlgmr.msra.gmra.mxu0 %vm517_vm6, %v1512_v21  ;;  %v2040_v21 = vld [vmem:[%s2722_s3 + $0x28] ss:$0 sm:$0xff] }
 0xa13   :  { %v2317_v22 = vpop.eup %2316  ;;  %2233 = vmatpush3.msra.mxu0 %v37_v24 }
 0xa14   :  { %v1514_v23 = vmul.f32 %v2317_v22, %v2313_v17  ;;  %2234 = vmatprep.subr.mxu0 %v36_v25 }
 0xa15   :  { %2235 = vmatpush3.msra.mxu0 %v36_v25  ;;  %v41_v25 = vld [vmem:[%s2721_s2 + $0x98] sm:$0xff] }
 0xa16   :  { %2230 = vmatmul.mubr.msk.f32.vlgmr.msra.gmra.mxu1 %vm517_vm6, %v1514_v23  ;;  %2236 = vmatprep.subr.mxu0 %v35_v26 }
 0xa17   :  { %2237 = vmatpush3.msra.mxu0 %v35_v26  ;;  %2244 = vmatpush3.msra.mxu1 %v49_v2  ;;  %v40_v26 = vld [vmem:[%s2721_s2 + $0x90] sm:$0xff] }
 0xa18   :  { %2238 = vmatprep.subr.mxu0 %v34_v27  ;;  %2245 = vmatprep.subr.mxu1 %v48_v61 }
 0xa19   :  { %2239 = vmatpush3.msra.mxu0 %v34_v27  ;;  %2246 = vmatpush3.msra.mxu1 %v48_v61  ;;  %v39_v27 = vld [vmem:[%s2721_s2 + $0x88] sm:$0xff] }
 0xa1a   :  { %2247 = vmatprep.subr.mxu1 %v47_v57 }
 0xa1b   :  { %2248 = vmatpush3.msra.mxu1 %v47_v57 }
 0xa1c   :  { %2249 = vmatprep.subr.mxu1 %v46_v6 }
 0xa1d   :  { %2250 = vmatpush3.msra.mxu1 %v46_v6 }
 0xad2   :  { %v1584_v28 = vpop.f32.mrf.mxu0 }
 0xad3   :  { %v1661_v29 = vmul.f32 %v2594_v49, %v1584_v28  ;;  %v38_v28 = vld [vmem:[%s2721_s2 + $0x80] sm:$0xff] }
 0xad4   :  { %v2226_v30 = vpop.f32.mrf.mxu0 }
 0xad5   :  { %v1663_v31 = vadd.f32 %v1661_v29, %v1338_v4  ;;  %v45_v4 = vld [vmem:[%s2721_s2 + $0xb8] sm:$0xff]  ;;  %v2041_v29 = vld [vmem:[%s2722_s3 + $0x20] ss:$0 sm:$0xff]  ;;  %s2350_s2 = smov [#allocation2]  }
 0xad6   :  { %v1657_v32 = vpop.f32.mrf.mxu1  ;;  %2254 = vmatprep.subr.mxu0 %v45_v4  ;;  %s1986_s23 = sshll.u32 %s2350_s2, 4  ;;  %s1987_s23 = int_to_ptr.vmem [resolvable:$true] %s1986_s23 }
 0xad7   :  { %v1662_v33 = vmul.f32 %v2594_v49, %v1657_v32  ;;  %2240 = vmatprep.mubr.msk.f32.mxu0 %vm60_vm0, %v1663_v31  ;;  %s2326_s24 = scalar_lea.vmem %s1987_s23, 256  ;;  %p2331_p1 = scmp.lt.s32.totalorder %s1987_s23, %s1987_s23 }
 0xad8   :  { %v2231_v35 = vpop.f32.mrf.mxu1  ;;  %p2327_p0 = scmp.ne.s32.totalorder %s1987_s23, %s2326_s24  ;;  %p2332_p2 = scmp.lt.s32.totalorder %s2326_s24, %s2326_s24 }
 0xad9   :  { %v1664_v36 = vadd.f32 %v1662_v33, %v1339_v60 }
 0xada   :  { %p2333_p3 = por %p2332_p2, %p2331_p1 }
 0xadb   :  { %2241 = vmatmul.mubr.msk.f32.vlgmr.msra.gmra.mxu0 %vm60_vm0, %v1664_v36 }
 0xadc   :  { %2255 = vmatpush3.msra.mxu0 %v45_v4  ;;  %p2334_p4 = pnand %p2333_p3, %p2327_p0 }
 0xadd   :  { %2256 = vmatprep.subr.mxu0 %v44_v53 }
 0xade   :  { %2257 = vmatpush3.msra.mxu0 %v44_v53 }
 0xadf   :  { %2258 = vmatprep.subr.mxu0 %v43_v54 }
 0xae0   :  { %2259 = vmatpush3.msra.mxu0 %v43_v54 }
 0xae1   :  { %2260 = vmatprep.subr.mxu0 %v42_v55 }
 0xae2   :  { %2261 = vmatpush3.msra.mxu0 %v42_v55 }
 0xae3   :  { %2262 = vmatprep.subr.mxu0 %v41_v25 }
 0xae4   :  { %2263 = vmatpush3.msra.mxu0 %v41_v25 }
 0xae5   :  { %2264 = vmatprep.subr.mxu0 %v40_v26 }
 0xae6   :  { %2265 = vmatpush3.msra.mxu0 %v40_v26 }
 0xae7   :  { %2266 = vmatprep.subr.mxu0 %v39_v27 }
 0xae8   :  { %2267 = vmatpush3.msra.mxu0 %v39_v27 }
 0xae9   :  { %2268 = vmatprep.subr.mxu0 %v38_v28 }
 0xaea   :  { %2269 = vmatpush3.msra.mxu0 %v38_v28 }
 0xb9b   :  { %v2242_v3 = vpop.f32.mrf.mxu0 }
 0xb9c   :  { %v1747_v38 = vadd.f32 %v2242_v3, %v2036_v37 }
 0xb9d   :  { %v1741_v34 = vpop.f32.mrf.mxu0 }
 0xb9e   :  { %v2649_v39 = vadd.f32 %v1747_v38, %v2386_v1  ;;  %v1742_v40 = vadd.f32 %v2036_v37, %v1741_v34  ;;  %v2044_v37 = vld [vmem:[%s2722_s3 + $0x29] ss:$0 sm:$0xff] }
 0xba0   :  { %v2652_v41 = vadd.f32 %v1742_v40, %v2381_v0  ;;  %v1755_v42 = vsel %vm60_vm0, %v2649_v39, 0.0 }
 0xba1   :  { %1756 = vadd.xlane.f32.xlu1 %v1755_v42 }
 0xba2   :  { %v1752_v43 = vsel %vm60_vm0, %v2652_v41, 0.0 }
 0xba3   :  { %1753 = vadd.xlane.f32.xlu0 %v1752_v43 }
 0xc2a   :  { %v1757_v44 = vpop.xlane.xlu1 %1756 }
 0xc2b   :  { %v1759_v45 = vmul.f32 0.03125, %v1757_v44 }
 0xc2c   :  { %v1754_v46 = vpop.xlane.xlu0 %1753 }
 0xc2d   :  { %v1761_v47 = vsub.f32 %v2649_v39, %v1759_v45  ;;  %v1758_v48 = vmul.f32 0.03125, %v1754_v46 }
 0xc2f   :  { %v1760_v1 = vsub.f32 %v2652_v41, %v1758_v48  ;;  %v1763_v49 = vmul.f32 %v1761_v47, %v1761_v47  ;;  %v1777_v18 = vmul.f32 %v2039_v16, %v1761_v47 }
 0xc31   :  { %v1767_v0 = vsel %vm60_vm0, %v1763_v49, 0.0  ;;  %v1762_v50 = vmul.f32 %v1760_v1, %v1760_v1  ;;  %v1776_v13 = vmul.f32 %v2039_v16, %v1760_v1 }
 0xc32   :  { %1768 = vadd.xlane.f32.xlu1 %v1767_v0 }
 0xc33   :  { %v1764_v51 = vsel %vm60_vm0, %v1762_v50, 0.0 }
 0xc34   :  { %1765 = vadd.xlane.f32.xlu0 %v1764_v51 }
 0xcbb   :  { %v1769_v56 = vpop.xlane.xlu1 %1768 }
 0xcbc   :  { %v1771_v58 = vmul.f32 0.032258064, %v1769_v56 }
 0xcbd   :  { %v1766_v59 = vpop.xlane.xlu0 %1765 }
 0xcbe   :  { %2318 = vrsqrt.f32 %v1771_v58  ;;  %v1770_v60 = vmul.f32 0.032258064, %v1766_v59  ;;  %vm1787_vm7 = vcmp.eq.f32.partialorder %v1771_v58, inf  ;;  %v1790_v52 = vand.u32 2147483648, %v1771_v58 }
 0xcbf   :  { %vm1789_vm8 = vcmp.eq.f32.partialorder %v1771_v58, 0.0 }
 0xcc0   :  { %2320 = vrsqrt.f32 %v1770_v60  ;;  %vm1780_vm9 = vcmp.eq.f32.partialorder %v1770_v60, inf  ;;  %v1783_v14 = vand.u32 2147483648, %v1770_v60  ;;  %vm1782_vm10 = vcmp.eq.f32.partialorder %v1770_v60, 0.0 }
 0xccb   :  { %v2319_v62 = vpop.eup %2318 }
 0xccc   :  { %v1786_v8 = vmul.f32 %v2319_v62, %v1771_v58 }
 0xccd   :  { %v2321_v63 = vpop.eup %2320 }
 0xcce   :  { %v1788_v5 = vsel %vm1787_vm7, %v1771_v58, %v1786_v8  ;;  %v1779_v10 = vmul.f32 %v2321_v63, %v1770_v60 }
 0xccf   :  { %v1791_v7 = vsel %vm1789_vm8, %v1790_v52, %v1788_v5 }
 0xcd0   :  { %v1793_v11 = vadd.f32 1e-06, %v1791_v7  ;;  %v1781_v12 = vsel %vm1780_vm9, %v1770_v60, %v1779_v10 }
 0xcd1   :  { %v1784_v9 = vsel %vm1782_vm10, %v1783_v14, %v1781_v12 }
 0xcd2   :  { %2322 = vrcp.f32 %v1793_v11  ;;  %v1792_v15 = vadd.f32 1e-06, %v1784_v9 }
 0xcd4   :  { %2324 = vrcp.f32 %v1792_v15 }
 0xcdf   :  { %v2323_v17 = vpop.eup %2322 }
 0xce0   :  { %v1797_v20 = vmul.f32 %v2323_v17, %v1777_v18 }
 0xce1   :  { %v2325_v19 = vpop.eup %2324 }
 0xce2   :  { %v1795_v22 = vmul.f32 %v2325_v19, %v1776_v13  ;;  %v1803_v24 = vadd.f32 %v2040_v21, %v1797_v20 }
 0xce4   :  { %v1802_v23 = vadd.f32 %v2040_v21, %v1795_v22 }
 0xce6   :  { %2251 = vmatprep.mubr.msk.f32.mxu1 %vm60_vm0, %v1802_v23 }
 0xce7   :  { %2252 = vmatmul.mubr.msk.f32.vlgmr.msra.gmra.mxu1 %vm60_vm0, %v1803_v24 }
 0xda7   :  { %v2253_v30 = vpop.f32.mrf.mxu1 }
 0xda8   :  { %v1886_v31 = vadd.f32 %v2253_v30, %v2041_v29 }
 0xda9   :  { %v1880_v32 = vpop.f32.mrf.mxu1 }
 0xdaa   :  { %v1881_v33 = vadd.f32 %v2041_v29, %v1880_v32  ;;  %v1890_v36 = vmax.f32 %v1886_v31, 0.0 }
 0xdac   :  { %v1889_v35 = vmax.f32 %v1881_v33, 0.0 }
 0xdae   :  { %2270 = vmatprep.mubr.msk.f32.mxu0 %vm1895_vm11, %v1889_v35 }
 0xdaf   :  { %2271 = vmatmul.mubr.msk.f32.vlgmr.msra.gmra.mxu0 %vm1895_vm11, %v1890_v36 }
 0xe6f   :  { %v2272_v3 = vpop.f32.mrf.mxu0 }
 0xe70   :  { %v1974_v38 = vadd.f32 %v2272_v3, %v2044_v37 }
 0xe71   :  { %v1968_v34 = vpop.f32.mrf.mxu0 }
 0xe72   :  { %v1978_v40 = vadd.f32 %v1974_v38, %v2649_v39  ;;  %v1969_v42 = vadd.f32 %v2044_v37, %v1968_v34 }
 0xe74   :  { %1980 = vst.msk [vmem:[#allocation2 + $0x8] sm:$0xff] %vm60_vm0, %v1978_v40  ;;  %v1977_v43 = vadd.f32 %v1969_v42, %v2652_v41 }
 0xe76   :  { %1979 = vst.msk [vmem:[#allocation2] sm:$0xff] %vm60_vm0, %v1977_v43 }
 0xe77   :  { %2337 = shalt.err (!%p2334_p4)
}
 0xe78   :  { %s2351_s3 = smov 128   ;;  %s2352_s25 = smov 8  }
 0xe79   :  { %1992 = dma.vmem_to_hbm [thread:$0]  %s1987_s23, 256, %s2723_s4, [#allocation3], %s2351_s3, %s2351_s3, %s2352_s25  }
 0xe7a   :  { %2346 = dma.done.wait [#allocation3], 256  }
 0xe7b   :  { %2347 = vsyncadd [#allocation3], 4294967040 }
 0xe7c   :  { %1996 = vsyncpa [#allocation3], 1 }

</bundles_post_ra>
